<compile_context>
chip_gen: v6e
topology: v6e:2x2x1
jax: 0.10.0
libtpu: 0.0.40
codegen_flags: <defaults>
</compile_context>

<pallas_src>
import jax
import jax.numpy as jnp
from jax import lax
from jax.experimental import pallas as pl
from jax.experimental.pallas import tpu as pltpu


def _round_up(x: int, m: int) -> int:
    return ((x + m - 1) // m) * m


def _round_down(x: int, m: int) -> int:
    return (x // m) * m


def _linear_kernel(x_ref, w_ref, b_ref, o_ref):
    """One (tm, O) output tile: full-K contraction + bias add, no reduction axis.

    x_ref: (tm, F)   -- streamed batch tile
    w_ref: (O, F)    -- VMEM-resident weight (PyTorch nn.Linear layout)
    b_ref: (1, O)    -- VMEM-resident bias
    o_ref: (tm, O)
    """
    acc = lax.dot_general(
        x_ref[...],
        w_ref[...],
        dimension_numbers=(((1,), (1,)), ((), ())),  # contract feature dims: x @ W^T
        preferred_element_type=jnp.float32,
    )
    o_ref[...] = (acc + b_ref[...]).astype(o_ref.dtype)


@jax.jit
def lasso_regression_forward(x, weight, bias):
    """Forward of LassoRegression: y = x @ weight.T + bias.

    x:      (B, F) f32
    weight: (O, F) f32 (PyTorch nn.Linear layout, never transposed on host)
    bias:   (O,)   f32
    """
    B, F = x.shape
    O, F2 = weight.shape
    assert F == F2 and bias.shape == (O,)

    itemsize = 4  # f32
    # Conservative VMEM budget (fits v5e/v6e and v7x's tighter 64 MiB phys /
    # 32 MiB scoped). Count worst-case double buffering on every operand.
    vmem_budget = 24 * 1024 * 1024
    resident_bytes = 2 * (O * F + O) * itemsize          # weight + bias
    per_row_bytes = 2 * (F + O) * itemsize               # x tile + out tile, per batch row
    avail = vmem_budget - resident_bytes

    if avail < 8 * per_row_bytes:
        # Weight too large to keep VMEM-resident -- not the Lasso regime.
        # TODO(synk): add a K-tiled reduction path if huge dense layers are ever needed.
        return x @ weight.T + bias

    # Batch tile: sublane-aligned, grown toward 512 (≈85% of HBM roofline per
    # measured tiled-stream data), capped by the VMEM budget. For the tiny demo
    # shape this collapses to a single-step grid with full-array blocks.
    tm = min(_round_up(B, 8), 512, max(8, _round_down(avail // per_row_bytes, 8)))
    grid = (pl.cdiv(B, tm),)

    bias2d = bias.reshape(1, O)

    return pl.pallas_call(
        _linear_kernel,
        out_shape=jax.ShapeDtypeStruct((B, O), x.dtype),
        grid=grid,
        in_specs=[
            pl.BlockSpec((tm, F), lambda i: (i, 0)),   # x: stream over batch, full K
            pl.BlockSpec((O, F), lambda i: (0, 0)),    # weight: VMEM-resident
            pl.BlockSpec((1, O), lambda i: (0, 0)),    # bias:   VMEM-resident
        ],
        out_specs=pl.BlockSpec((tm, O), lambda i: (i, 0)),
        compiler_params=pltpu.CompilerParams(
            dimension_semantics=("parallel",),          # v7x: shard batch over 2 TCs
            vmem_limit_bytes=32 * 1024 * 1024,          # above v5e's 16 MiB scoped default
        ),
    )(x, weight, bias2d)


if __name__ == "__main__":
    # Small shapes consistent with the module: input_size=32, output=16, batch=8.
    B, F, O = 8, 32, 16
    key = jax.random.PRNGKey(0)
    kx, kw, kb = jax.random.split(key, 3)

    x = jax.random.normal(kx, (B, F), dtype=jnp.float32)
    # Deterministic parameter init (mimics nn.Linear uniform(-1/sqrt(F), 1/sqrt(F))).
    bound = 1.0 / float(F) ** 0.5
    weight = jax.random.uniform(kw, (O, F), minval=-bound, maxval=bound, dtype=jnp.float32)
    bias = jax.random.uniform(kb, (O,), minval=-bound, maxval=bound, dtype=jnp.float32)

    out = lasso_regression_forward(x, weight, bias)
    jax.block_until_ready(out)

    ref = x @ weight.T + bias
    assert out.shape == (B, O)
    assert jnp.allclose(out, ref, atol=1e-5, rtol=1e-5)

    # Also exercise the un-padded ragged-batch path (B not a multiple of the
    # batch tile): garbage rows in the padded last block must never land.
    B2 = 20
    x2 = jax.random.normal(jax.random.PRNGKey(1), (B2, F), dtype=jnp.float32)
    out2 = lasso_regression_forward(x2, weight, bias)
    jax.block_until_ready(out2)
    ref2 = x2 @ weight.T + bias
    assert out2.shape == (B2, O)
    assert jnp.allclose(out2, ref2, atol=1e-5, rtol=1e-5)

    print("KERNEL_OK")
</pallas_src>

<mosaic_0001>
module attributes {stable_mosaic.version = 11 : i64} {
  func.func @_linear_kernel(%arg0: i32, %arg1: memref<8x32xf32, #tpu.memory_space<vmem>>, %arg2: memref<16x32xf32, #tpu.memory_space<vmem>>, %arg3: memref<1x16xf32, #tpu.memory_space<vmem>>, %arg4: memref<8x16xf32, #tpu.memory_space<vmem>>) attributes {dimension_semantics = [#tpu.dimension_semantics<parallel>], iteration_bounds = array<i64: 1>, scalar_prefetch = 0 : i64, scratch_operands = 0 : i64, tpu.core_type = #tpu.core_type<tc>, window_params = [{transform_indices = @transform_0, window_bounds = array<i64: 8, 32>}, {pipeline_mode = #tpu.pipeline_mode<synchronous>, transform_indices = @transform_1, window_bounds = array<i64: 16, 32>}, {pipeline_mode = #tpu.pipeline_mode<synchronous>, transform_indices = @transform_2, window_bounds = array<i64: 1, 16>}, {transform_indices = @transform_3, window_bounds = array<i64: 8, 16>}]} {
    %c0 = arith.constant 0 : index
    %c0_0 = arith.constant 0 : index
    %0 = vector.load %arg1[%c0, %c0_0] : memref<8x32xf32, #tpu.memory_space<vmem>>, vector<8x32xf32>
    %c0_1 = arith.constant 0 : index
    %c0_2 = arith.constant 0 : index
    %1 = vector.load %arg2[%c0_1, %c0_2] : memref<16x32xf32, #tpu.memory_space<vmem>>, vector<16x32xf32>
    %cst = arith.constant dense<0.000000e+00> : vector<8x16xf32>
    %2 = tpu.matmul %0, %1, %cst {dimension_numbers = #tpu.dot_dimension_numbers<[1], [1], [0], [0], [0, 0, 1, 0], [], []>} : vector<8x32xf32>, vector<16x32xf32>, vector<8x16xf32> -> vector<8x16xf32>
    %c0_3 = arith.constant 0 : index
    %c0_4 = arith.constant 0 : index
    %3 = vector.load %arg3[%c0_3, %c0_4] : memref<1x16xf32, #tpu.memory_space<vmem>>, vector<1x16xf32>
    %4 = vector.broadcast %3 : vector<1x16xf32> to vector<8x16xf32>
    %5 = arith.addf %2, %4 : vector<8x16xf32>
    %c0_5 = arith.constant 0 : index
    %c0_6 = arith.constant 0 : index
    %6 = vector.load %arg4[%c0_5, %c0_6] : memref<8x16xf32, #tpu.memory_space<vmem>>, vector<8x16xf32>
    tpu.vector_store %arg4[%c0_5, %c0_6], %5 {strides = array<i32>} : memref<8x16xf32, #tpu.memory_space<vmem>>, vector<8x16xf32>,
    return
  }
  func.func @transform_0(%arg0: i32) -> (i32, i32) {
    %c0_i32 = arith.constant 0 : i32
    %c0_i32_0 = arith.constant 0 : i32
    return %arg0, %c0_i32 : i32, i32
  }
  func.func @transform_1(%arg0: i32) -> (i32, i32) {
    %c0_i32 = arith.constant 0 : i32
    %c0_i32_0 = arith.constant 0 : i32
    %c0_i32_1 = arith.constant 0 : i32
    return %c0_i32, %c0_i32_0 : i32, i32
  }
  func.func @transform_2(%arg0: i32) -> (i32, i32) {
    %c0_i32 = arith.constant 0 : i32
    %c0_i32_0 = arith.constant 0 : i32
    %c0_i32_1 = arith.constant 0 : i32
    return %c0_i32, %c0_i32_0 : i32, i32
  }
  func.func @transform_3(%arg0: i32) -> (i32, i32) {
    %c0_i32 = arith.constant 0 : i32
    %c0_i32_0 = arith.constant 0 : i32
    return %arg0, %c0_i32 : i32, i32
  }
}

</mosaic_0001>

<bundles_post_ra>
// kernel: lasso_regression_forward.1
= control target key start
LH: loop header
LB: loop body
LE: loop exit
PB: predicated region body
PF: predicated region fallthrough
CT: control target
= control target key end

     0   :  { %8 = vsyncpa [#allocation3], 0  ;;  %s275_s0 = inlined_call_operand.hbm [shape: f32[8,32], index: 0, kind: input, shape index: {}]   ;;  %s276_s1 = inlined_call_operand.hbm [shape: f32[16,32], index: 1, kind: input, shape index: {}]   ;;  %s277_s2 = inlined_call_operand.vmem [shape: f32[1,16], index: 2, kind: input, shape index: {}]   ;;  %s278_s3 = inlined_call_operand.hbm [shape: f32[8,16], index: 3, kind: output, shape index: {}]  }
   0x1   :  { %9 = vsyncpa [#allocation6], 0 }
   0x2   :  { %10 = vsyncpa [#allocation4], 0  ;;  %s236_s12 = smov [#allocation2]   ;;  %s237_s14 = smov [#allocation5]  }
   0x3   :  { %s17_s13 = sshll.u32 %s236_s12, 4  ;;  %s26_s15 = sshll.u32 %s237_s14, 4  ;;  %s18_s13 = int_to_ptr.vmem [resolvable:$true] %s17_s13  ;;  %s27_s15 = int_to_ptr.vmem [resolvable:$true] %s26_s15 }
   0x4   :  { %s178_s16 = scalar_lea.vmem %s18_s13, 128  ;;  %p183_p1 = scmp.lt.s32.totalorder %s18_s13, %s18_s13 }
   0x5   :  { %p179_p0 = scmp.ne.s32.totalorder %s18_s13, %s178_s16  ;;  %p184_p2 = scmp.lt.s32.totalorder %s178_s16, %s178_s16 }
   0x7   :  { %p185_p3 = por %p184_p2, %p183_p1 }
   0x9   :  { %p186_p4 = pnand %p185_p3, %p179_p0 }
   0xb   :  { %189 = shalt.err (!%p186_p4)
}
   0xc   :  { %20 = dma.hbm_to_vmem [thread:$0]  %s275_s0, 128, %s18_s13, [#allocation3]  }
   0xd   :  { %s198_s19 = scalar_lea.vmem %s27_s15, 256  ;;  %p203_p6 = scmp.lt.s32.totalorder %s27_s15, %s27_s15 }
   0xe   :  { %p199_p5 = scmp.ne.s32.totalorder %s27_s15, %s198_s19  ;;  %p204_p7 = scmp.lt.s32.totalorder %s198_s19, %s198_s19 }
  0x10   :  { %p205_p8 = por %p204_p7, %p203_p6 }
  0x12   :  { %p206_p9 = pnand %p205_p8, %p199_p5 }
  0x14   :  { %209 = shalt.err (!%p206_p9)
}
  0x15   :  { %s238_s20 = smov 128   ;;  %s239_s21 = smov 8  }
  0x16   :  { %32 = dma.hbm_to_vmem [thread:$0]  %s276_s1, 256, %s27_s15, [#allocation6], %s238_s20, %s238_s20, %s239_s21  }
  0x17   :  { %230 = dma.done.wait [#allocation3], 128  }
  0x18   :  { %231 = vsyncadd [#allocation3], 4294967168 }
  0x19   :  { %232 = dma.done.wait [#allocation6], 256  }
  0x1a   :  { %233 = vsyncadd [#allocation6], 4294967040  ;;  %v240_v0 = vmov 0.0   ;;  %vm241_vm0 = vmmov 0   ;;  %vm51_vm1 = vcmask 261120   ;;  %v43_v1 = vld [vmem:[#allocation5 + $0x8] sm:$0xff] }
  0x1b   :  { %156 = vmatprep.subr.mxu0 %v240_v0  ;;  %160 = vmatprep.mubr.msk.f32.mxu0 %vm241_vm0, %v240_v0  ;;  %v42_v2 = vld [vmem:[#allocation5] sm:$0xff]  ;;  %v41_v3 = vld [vmem:[#allocation2] sm:$0xff]  ;;  %s242_s1 = smov [#allocation7]   ;;  %vm131_vm2 = vcmask 130048  }
  0x1c   :  { %157 = vmatpush3.xpose.msk.msra.mxu0 %vm51_vm1, %v43_v1  ;;  %v149_v4 = vld [vmem:[%s277_s2] ss:$0 sm:$0xff]  ;;  %s139_s25 = sshll.u32 %s242_s1, 4  ;;  %s140_s25 = int_to_ptr.vmem [resolvable:$true] %s139_s25 }
  0x1d   :  { %158 = vmatprep.subr.mxu0 %v240_v0  ;;  %s210_s26 = scalar_lea.vmem %s140_s25, 128  ;;  %p215_p11 = scmp.lt.s32.totalorder %s140_s25, %s140_s25 }
  0x1e   :  { %p211_p10 = scmp.ne.s32.totalorder %s140_s25, %s210_s26  ;;  %p216_p12 = scmp.lt.s32.totalorder %s210_s26, %s210_s26 }
  0x20   :  { %159 = vmatpush3.xpose.msk.msra.mxu0 %vm51_vm1, %v42_v2  ;;  %p217_p13 = por %p216_p12, %p215_p11 }
  0x22   :  { %p218_p0 = pnand %p217_p13, %p211_p10 }
  0x23   :  { %161 = vmatmul.mubr.msk.f32.vlgmr.msra.gmra.mxu0 %vm51_vm1, %v41_v3 }
  0xe3   :  { %v127_v5 = vpop.f32.mrf.mxu0 }
  0xe4   :  { %v128_v6 = vadd.f32 %v149_v4, %v127_v5 }
  0xe5   :  { %v162_v7 = vpop.f32.mrf.mxu0 }
  0xe6   :  { %132 = vst.msk [vmem:[#allocation7] sm:$0xff] %vm131_vm2, %v128_v6 }
  0xe7   :  { %221 = shalt.err (!%p218_p0)
}
  0xe8   :  { %142 = dma.vmem_to_hbm [thread:$0]  %s140_s25, 128, %s278_s3, [#allocation4]  }
  0xe9   :  { %234 = dma.done.wait [#allocation4], 128  }
  0xea   :  { %235 = vsyncadd [#allocation4], 4294967168 }
  0xeb   :  { %146 = vsyncpa [#allocation3], 1 }
  0xec   :  { %147 = vsyncpa [#allocation6], 1 }
  0xed   :  { %148 = vsyncpa [#allocation4], 1 }

</bundles_post_ra>
